<compile_context>
chip_gen: v7x
topology: tpu7x:2x2x1
jax: 0.10.0
libtpu: 0.0.40
codegen_flags: <defaults>
</compile_context>

<pallas_src>
import functools
import math

import jax
import jax.numpy as jnp
from jax.experimental import pallas as pl
from jax.experimental.pallas import tpu as pltpu


def _round_up(x: int, m: int) -> int:
    return (x + m - 1) // m * m


def _nbytes(shape, dtype) -> int:
    return math.prod(shape) * jnp.dtype(dtype).itemsize


def _vmem_capacity_bytes() -> int:
    try:
        return int(pltpu.get_tpu_info().vmem_capacity_bytes)
    except Exception:
        return 64 * 2**20  # conservative (v7x per-TC)


# --------------------------------------------------------------------------
# Kernel
# --------------------------------------------------------------------------
def _fused_mlp_kernel(x_ref, *refs, n_layers: int):
    """refs = (w0, b0, w1, b1, ..., w_{L-1}, b_{L-1}, out)."""
    o_ref = refs[-1]
    wb = refs[:-1]
    h = x_ref[...]                      # (tm, D0_pad), compute dtype
    for i in range(n_layers):
        w = wb[2 * i][...]              # (Din_pad, Dout_pad), compute dtype
        b = wb[2 * i + 1][...]          # (1, Dout_pad), f32
        # bf16 (or f32) operands on the MXU, f32 accumulation.
        y = jnp.dot(h.astype(w.dtype), w, preferred_element_type=jnp.float32)
        y = y + b                       # f32 bias add (VPU)
        if i < n_layers - 1:            # Tanh between layers, not after last
            y = jnp.tanh(y)             # EUP, f32
        h = y                           # stays in VMEM/vregs (never HBM)
    o_ref[...] = h.astype(o_ref.dtype)


# --------------------------------------------------------------------------
# One-time parameter preparation (padding + cast hoisted out of forward)
# --------------------------------------------------------------------------
def prepare_mlp(params, in_features: int, *, compute_dtype=jnp.bfloat16):
    """Pad/cast weights once.  params = [(W (in,out), b (out,)), ...]."""
    n_layers = len(params)
    dims = [in_features] + [w.shape[1] for (w, _) in params]
    for i, (w, b) in enumerate(params):
        assert w.shape == (dims[i], dims[i + 1]), (w.shape, dims[i], dims[i + 1])
        assert b.shape == (dims[i + 1],), b.shape

    # Lane-dense padding of every feature dim (full 128-lane vregs / MXU cols).
    dims_p = [_round_up(d, 128) for d in dims]

    padded = []
    for li, (w, b) in enumerate(params):
        kp, npad = dims_p[li], dims_p[li + 1]
        w_p = (jnp.zeros((kp, npad), compute_dtype)
               .at[:dims[li], :dims[li + 1]].set(w.astype(compute_dtype)))
        b_p = (jnp.zeros((1, npad), jnp.float32)
               .at[0, :dims[li + 1]].set(b.astype(jnp.float32)))
        padded.append((w_p, b_p))

    return dict(padded=padded, dims=dims, dims_p=dims_p,
                n_layers=n_layers, compute_dtype=compute_dtype)


# --------------------------------------------------------------------------
# Forward
# --------------------------------------------------------------------------
def mlp_forward(prepared, x, *, block_m: int = 512):
    """Fused MLP forward: x:(M, sizes[0]) -> (M, sizes[-1])."""
    dims, dims_p = prepared["dims"], prepared["dims_p"]
    n_layers = prepared["n_layers"]
    compute_dtype = prepared["compute_dtype"]

    M, K0 = x.shape
    assert K0 == dims[0], (K0, dims[0])
    out_dtype = x.dtype

    # M tiling: sublane-aligned, and >=2 grid steps whenever M > 8 so both
    # TensorCores on v7x get work under dimension_semantics=("parallel",).
    tm = max(8, min(block_m, _round_up(-(-M // 2), 8)))
    m_pad = _round_up(M, tm)

    # Pad the activation only (weights are pre-padded/cast in prepare_mlp).
    x_p = (jnp.zeros((m_pad, dims_p[0]), compute_dtype)
           .at[:M, :K0].set(x.astype(compute_dtype)))

    operands = [x_p]
    # x / out: default 2-deep pipelining across the M grid.
    in_specs = [pl.BlockSpec((tm, dims_p[0]), lambda i: (i, 0))]
    for li, (w_p, b_p) in enumerate(prepared["padded"]):
        kp, npad = dims_p[li], dims_p[li + 1]
        operands += [w_p, b_p]
        # Constant index_map -> resident in VMEM across the grid; single-buffer
        # them so they don't cost 2x their size in VMEM.
        in_specs += [
            pl.BlockSpec((kp, npad), lambda i: (0, 0),
                         pipeline_mode=pl.Buffered(1)),
            pl.BlockSpec((1, npad), lambda i: (0, 0),
                         pipeline_mode=pl.Buffered(1)),
        ]
    out_spec = pl.BlockSpec((tm, dims_p[-1]), lambda i: (i, 0))

    # VMEM budget: 2x x-tile + 2x out-tile (pipelined), 1x each weight/bias
    # (single-buffered, resident), plus f32 activation slack.
    est = 2 * _nbytes((tm, dims_p[0]), compute_dtype)
    for li in range(n_layers):
        est += _nbytes((dims_p[li], dims_p[li + 1]), compute_dtype)
        est += _nbytes((1, dims_p[li + 1]), jnp.float32)
    est += 2 * _nbytes((tm, dims_p[-1]), out_dtype)
    est += 3 * tm * max(dims_p) * 4

    cap = _vmem_capacity_bytes()
    # Always set a limit (v5e's default scoped VMEM is only 16 MiB), clamped
    # to ~85% of the real device capacity (v7x is 64 MiB, not 128).
    vmem_limit = min(max((est * 5) // 4, 16 * 2**20), (cap * 85) // 100)
    # TODO(synk): if est > vmem_limit (production sizes), fall back to an
    # N-tiled per-layer pipeline instead of relying on the compiler.

    kernel = functools.partial(_fused_mlp_kernel, n_layers=n_layers)
    out_p = pl.pallas_call(
        kernel,
        out_shape=jax.ShapeDtypeStruct((m_pad, dims_p[-1]), out_dtype),
        grid_spec=pltpu.PrefetchScalarGridSpec(
            num_scalar_prefetch=0,
            grid=(m_pad // tm,),
            in_specs=in_specs,
            out_specs=out_spec,
        ),
        compiler_params=pltpu.CompilerParams(
            dimension_semantics=("parallel",),   # row tiles split across TCs
            vmem_limit_bytes=int(vmem_limit),
        ),
    )(*operands)
    return out_p[:M, :dims[-1]]


# --------------------------------------------------------------------------
# Reference / init
# --------------------------------------------------------------------------
def init_mlp_params(key, sizes, bias=True, dtype=jnp.float32):
    """torch.nn.Linear-style init: U(-1/sqrt(fan_in), 1/sqrt(fan_in)); W stored (in, out)."""
    params = []
    for i in range(len(sizes) - 1):
        fan_in, fan_out = sizes[i], sizes[i + 1]
        key, kw, kb = jax.random.split(key, 3)
        bound = 1.0 / (fan_in ** 0.5)
        w = jax.random.uniform(kw, (fan_in, fan_out), dtype, -bound, bound)
        if bias:
            b = jax.random.uniform(kb, (fan_out,), dtype, -bound, bound)
        else:
            b = jnp.zeros((fan_out,), dtype)
        params.append((w, b))
    return params


def mlp_forward_ref(params, x):
    n_layers = len(params)
    for i, (w, b) in enumerate(params):
        x = x @ w + b
        if i < n_layers - 1:
            x = jnp.tanh(x)
    return x


if __name__ == "__main__":
    key = jax.random.PRNGKey(0)
    k_in, k_par = jax.random.split(key)

    # e.g. MLP((prefix_size, hidden, prefix_length * embed)) at toy scale
    sizes = (32, 64, 16)
    batch = 8

    x = jax.random.normal(k_in, (batch, sizes[0]), jnp.float32)
    params = init_mlp_params(k_par, sizes, bias=True)
    ref = mlp_forward_ref(params, x)

    # Default fast path: bf16 MXU operands, f32 accumulation / bias / tanh.
    prep_bf16 = prepare_mlp(params, sizes[0], compute_dtype=jnp.bfloat16)
    out_bf16 = jax.block_until_ready(mlp_forward(prep_bf16, x))
    assert out_bf16.shape == (batch, sizes[-1]), out_bf16.shape
    assert jnp.allclose(out_bf16, ref, atol=5e-2, rtol=5e-2), "bf16 mismatch vs reference"

    # f32 path (tight tolerance vs. the f32 reference).
    prep_f32 = prepare_mlp(params, sizes[0], compute_dtype=jnp.float32)
    out_f32 = jax.block_until_ready(mlp_forward(prep_f32, x))
    assert out_f32.shape == (batch, sizes[-1]), out_f32.shape
    assert jnp.allclose(out_f32, ref, atol=1e-5, rtol=1e-5), "f32 mismatch vs reference"

    print("KERNEL_OK")
</pallas_src>

<mosaic_0001>
module attributes {stable_mosaic.version = 11 : i64} {
  func.func @_fused_mlp_kernel(%arg0: i32, %arg1: memref<8x128xbf16, #tpu.memory_space<vmem>>, %arg2: memref<128x128xbf16, #tpu.memory_space<vmem>>, %arg3: memref<1x128xf32, #tpu.memory_space<vmem>>, %arg4: memref<128x128xbf16, #tpu.memory_space<vmem>>, %arg5: memref<1x128xf32, #tpu.memory_space<vmem>>, %arg6: memref<8x128xf32, #tpu.memory_space<vmem>>) attributes {dimension_semantics = [#tpu.dimension_semantics<parallel>], iteration_bounds = array<i64: 1>, scalar_prefetch = 0 : i64, scratch_operands = 0 : i64, tpu.core_type = #tpu.core_type<tc>, window_params = [{transform_indices = @transform_0, window_bounds = array<i64: 8, 128>}, {pipeline_mode = #tpu.pipeline_mode<synchronous>, transform_indices = @transform_1, window_bounds = array<i64: 128, 128>}, {pipeline_mode = #tpu.pipeline_mode<synchronous>, transform_indices = @transform_2, window_bounds = array<i64: 1, 128>}, {pipeline_mode = #tpu.pipeline_mode<synchronous>, transform_indices = @transform_3, window_bounds = array<i64: 128, 128>}, {pipeline_mode = #tpu.pipeline_mode<synchronous>, transform_indices = @transform_4, window_bounds = array<i64: 1, 128>}, {transform_indices = @transform_5, window_bounds = array<i64: 8, 128>}]} {
    %c0 = arith.constant 0 : index
    %c0_0 = arith.constant 0 : index
    %0 = vector.load %arg1[%c0, %c0_0] : memref<8x128xbf16, #tpu.memory_space<vmem>>, vector<8x128xbf16>
    %c0_1 = arith.constant 0 : index
    %c0_2 = arith.constant 0 : index
    %1 = vector.load %arg2[%c0_1, %c0_2] : memref<128x128xbf16, #tpu.memory_space<vmem>>, vector<128x128xbf16>
    %c0_3 = arith.constant 0 : index
    %c0_4 = arith.constant 0 : index
    %2 = vector.load %arg3[%c0_3, %c0_4] : memref<1x128xf32, #tpu.memory_space<vmem>>, vector<1x128xf32>
    %cst = arith.constant dense<0.000000e+00> : vector<8x128xf32>
    %3 = tpu.matmul %0, %1, %cst {dimension_numbers = #tpu.dot_dimension_numbers<[1], [0], [0], [1], [0, 0, 1, 1], [], []>} : vector<8x128xbf16>, vector<128x128xbf16>, vector<8x128xf32> -> vector<8x128xf32>
    %4 = vector.broadcast %2 : vector<1x128xf32> to vector<8x128xf32>
    %5 = arith.addf %3, %4 : vector<8x128xf32>
    %6 = math.tanh %5 : vector<8x128xf32>
    %c0_5 = arith.constant 0 : index
    %c0_6 = arith.constant 0 : index
    %7 = vector.load %arg4[%c0_5, %c0_6] : memref<128x128xbf16, #tpu.memory_space<vmem>>, vector<128x128xbf16>
    %c0_7 = arith.constant 0 : index
    %c0_8 = arith.constant 0 : index
    %8 = vector.load %arg5[%c0_7, %c0_8] : memref<1x128xf32, #tpu.memory_space<vmem>>, vector<1x128xf32>
    %9 = arith.truncf %6 : vector<8x128xf32> to vector<8x128xbf16>
    %cst_9 = arith.constant dense<0.000000e+00> : vector<8x128xf32>
    %10 = tpu.matmul %9, %7, %cst_9 {dimension_numbers = #tpu.dot_dimension_numbers<[1], [0], [0], [1], [0, 0, 1, 1], [], []>} : vector<8x128xbf16>, vector<128x128xbf16>, vector<8x128xf32> -> vector<8x128xf32>
    %11 = vector.broadcast %8 : vector<1x128xf32> to vector<8x128xf32>
    %12 = arith.addf %10, %11 : vector<8x128xf32>
    %c0_10 = arith.constant 0 : index
    %c0_11 = arith.constant 0 : index
    %13 = vector.load %arg6[%c0_10, %c0_11] : memref<8x128xf32, #tpu.memory_space<vmem>>, vector<8x128xf32>
    tpu.vector_store %arg6[%c0_10, %c0_11], %12 {strides = array<i32>} : memref<8x128xf32, #tpu.memory_space<vmem>>, vector<8x128xf32>,
    return
  }
  func.func @transform_0(%arg0: i32) -> (i32, i32) {
    %c0_i32 = arith.constant 0 : i32
    %c0_i32_0 = arith.constant 0 : i32
    return %arg0, %c0_i32 : i32, i32
  }
  func.func @transform_1(%arg0: i32) -> (i32, i32) {
    %c0_i32 = arith.constant 0 : i32
    %c0_i32_0 = arith.constant 0 : i32
    %c0_i32_1 = arith.constant 0 : i32
    return %c0_i32, %c0_i32_0 : i32, i32
  }
  func.func @transform_2(%arg0: i32) -> (i32, i32) {
    %c0_i32 = arith.constant 0 : i32
    %c0_i32_0 = arith.constant 0 : i32
    %c0_i32_1 = arith.constant 0 : i32
    return %c0_i32, %c0_i32_0 : i32, i32
  }
  func.func @transform_3(%arg0: i32) -> (i32, i32) {
    %c0_i32 = arith.constant 0 : i32
    %c0_i32_0 = arith.constant 0 : i32
    %c0_i32_1 = arith.constant 0 : i32
    return %c0_i32, %c0_i32_0 : i32, i32
  }
  func.func @transform_4(%arg0: i32) -> (i32, i32) {
    %c0_i32 = arith.constant 0 : i32
    %c0_i32_0 = arith.constant 0 : i32
    %c0_i32_1 = arith.constant 0 : i32
    return %c0_i32, %c0_i32_0 : i32, i32
  }
  func.func @transform_5(%arg0: i32) -> (i32, i32) {
    %c0_i32 = arith.constant 0 : i32
    %c0_i32_0 = arith.constant 0 : i32
    return %arg0, %c0_i32 : i32, i32
  }
}

</mosaic_0001>

<bundles_post_ra>
// kernel: tpu_custom_call.1
= control target key start
LH: loop header
LB: loop body
LE: loop exit
PB: predicated region body
PF: predicated region fallthrough
CT: control target
= control target key end

     0   :  { %10 = vsyncpa [#allocation3], 0  ;;  %s597_s0 = inlined_call_operand.hbm [shape: bf16[8,128], index: 0, kind: input, shape index: {}]   ;;  %s598_s1 = inlined_call_operand.hbm [shape: bf16[128,128], index: 1, kind: input, shape index: {}]   ;;  %s599_s2 = inlined_call_operand.vmem [shape: f32[1,128], index: 2, kind: input, shape index: {}]   ;;  %s600_s3 = inlined_call_operand.hbm [shape: bf16[128,128], index: 3, kind: input, shape index: {}]   ;;  %s601_s4 = inlined_call_operand.vmem [shape: f32[1,128], index: 4, kind: input, shape index: {}]   ;;  %s602_s5 = inlined_call_operand.hbm [shape: f32[8,128], index: 5, kind: output, shape index: {}]  }
   0x1   :  { %11 = vsyncpa [#allocation6], 0 }
   0x2   :  { %12 = vsyncpa [#allocation4], 0  ;;  %s499_s18 = smov [#allocation5]   ;;  %s405_s22 = scalar_lea.hbm %s598_s1, 1024 }
   0x3   :  { %s28_s19 = sshll.u32 %s499_s18, 4  ;;  %p406_p0 = scmp.ne.s32.totalorder %s598_s1, %s405_s22  ;;  %s29_s19 = int_to_ptr.vmem [resolvable:$true] %s28_s19 }
   0x4   :  { %p409_p1 = scmp.lt.u32.totalorder %s405_s22, %s598_s1 }
   0x6   :  { %p411_p2 = pnand %p409_p1, %p406_p0 }
   0x8   :  { %414 = shalt.err (!%p411_p2)
}
   0x9   :  { %s415_s27 = scalar_lea.vmem %s29_s19, 1024  ;;  %p420_p4 = scmp.lt.s32.totalorder %s29_s19, %s29_s19 }
   0xa   :  { %p416_p3 = scmp.ne.s32.totalorder %s29_s19, %s415_s27  ;;  %p421_p5 = scmp.lt.s32.totalorder %s415_s27, %s415_s27 }
   0xc   :  { %p422_p6 = por %p421_p5, %p420_p4 }
   0xe   :  { %p423_p7 = pnand %p422_p6, %p416_p3 }
  0x10   :  { %426 = shalt.err (!%p423_p7)
}
  0x11   :  { %s500_s28 = smov 64   ;;  %s501_s29 = smov 4  }
  0x12   :  { %34 = dma.hbm_to_vmem [thread:$0]  %s598_s1, 1024, %s29_s19, [#allocation6], %s500_s28, %s500_s28, %s501_s29  }
  0x13   :  { %s502_s7 = smov [#allocation2]   ;;  %s503_s9 = smov [#allocation7]  }
  0x14   :  { %s19_s8 = sshll.u32 %s502_s7, 4  ;;  %s42_s10 = sshll.u32 %s503_s9, 4  ;;  %s20_s8 = int_to_ptr.vmem [resolvable:$true] %s19_s8  ;;  %s43_s10 = int_to_ptr.vmem [resolvable:$true] %s42_s10 }
  0x15   :  { %s427_s13 = scalar_lea.hbm %s597_s0, 64 }
  0x16   :  { %p428_p8 = scmp.ne.s32.totalorder %s597_s0, %s427_s13  ;;  %p431_p9 = scmp.lt.u32.totalorder %s427_s13, %s597_s0 }
  0x18   :  { %p433_p10 = pnand %p431_p9, %p428_p8 }
  0x1a   :  { %436 = shalt.err (!%p433_p10)
}
  0x1b   :  { %s437_s1 = scalar_lea.vmem %s20_s8, 64  ;;  %p442_p12 = scmp.lt.s32.totalorder %s20_s8, %s20_s8 }
  0x1c   :  { %p438_p11 = scmp.ne.s32.totalorder %s20_s8, %s437_s1  ;;  %p443_p13 = scmp.lt.s32.totalorder %s437_s1, %s437_s1 }
  0x1e   :  { %p444_p0 = por %p443_p13, %p442_p12 }
  0x20   :  { %p445_p1 = pnand %p444_p0, %p438_p11 }
  0x22   :  { %448 = shalt.err (!%p445_p1)
}
  0x23   :  { %22 = dma.hbm_to_vmem [thread:$0]  %s597_s0, 64, %s20_s8, [#allocation3]  }
  0x24   :  { %s449_s22 = scalar_lea.hbm %s600_s3, 1024 }
  0x25   :  { %p450_p2 = scmp.ne.s32.totalorder %s600_s3, %s449_s22  ;;  %p453_p3 = scmp.lt.u32.totalorder %s449_s22, %s600_s3 }
  0x27   :  { %p455_p4 = pnand %p453_p3, %p450_p2 }
  0x29   :  { %458 = shalt.err (!%p455_p4)
}
  0x2a   :  { %s459_s27 = scalar_lea.vmem %s43_s10, 1024  ;;  %p464_p6 = scmp.lt.s32.totalorder %s43_s10, %s43_s10 }
  0x2b   :  { %p460_p5 = scmp.ne.s32.totalorder %s43_s10, %s459_s27  ;;  %p465_p7 = scmp.lt.s32.totalorder %s459_s27, %s459_s27 }
  0x2d   :  { %p466_p8 = por %p465_p7, %p464_p6 }
  0x2f   :  { %p467_p9 = pnand %p466_p8, %p460_p5 }
  0x31   :  { %470 = shalt.err (!%p467_p9)
}
  0x32   :  { %48 = dma.hbm_to_vmem [thread:$0]  %s600_s3, 1024, %s43_s10, [#allocation6], %s500_s28, %s500_s28, %s501_s29  }
  0x33   :  { %493 = dma.done.wait [#allocation3], 64  }
  0x34   :  { %494 = vsyncadd [#allocation3], 4294967232 }
  0x35   :  { %495 = dma.done.wait [#allocation6], 2048  }
  0x36   :  { %496 = vsyncadd [#allocation6], 4294965248  ;;  %v504_v0 = vmov 0.0   ;;  %vm505_vm0 = vmmov 0   ;;  %v387_v1 = vld [vmem:[#allocation5] sm:$0xff]   ;;  %v388_v2 = vld [vmem:[#allocation5 + $0x8] sm:$0xff]  }
  0x37   :  { %339 = vmatprep.subr.bf16.mxu0 %v504_v0  ;;  %355 = vmatprep.mubr.msk.bf16.mxu0 %vm505_vm0, %v504_v0  ;;  %v389_v3 = vld [vmem:[#allocation5 + $0x10] sm:$0xff]   ;;  %v395_v4 = vld [vmem:[#allocation7] sm:$0xff]   ;;  %v390_v5 = vld [vmem:[#allocation5 + $0x18] sm:$0xff]   ;;  %s506_s7 = smov [#allocation8]  }
  0x38   :  { %359 = vmatprep.subr.bf16.mxu1 %v504_v0  ;;  %375 = vmatprep.mubr.msk.bf16.mxu1 %vm505_vm0, %v504_v0  ;;  %v396_v6 = vld [vmem:[#allocation7 + $0x8] sm:$0xff]   ;;  %v391_v7 = vld [vmem:[#allocation5 + $0x20] sm:$0xff]   ;;  %v397_v8 = vld [vmem:[#allocation7 + $0x10] sm:$0xff]   ;;  %s293_s8 = sshll.u32 %s506_s7, 4  ;;  %s294_s8 = int_to_ptr.vmem [resolvable:$true] %s293_s8 }
  0x39   :  { %340 = vmatpush3.bf16.msra.mxu0 %v387_v1  ;;  %360 = vmatpush3.bf16.msra.mxu1 %v395_v4  ;;  %v392_v9 = vld [vmem:[#allocation5 + $0x28] sm:$0xff]   ;;  %v398_v10 = vld [vmem:[#allocation7 + $0x18] sm:$0xff]   ;;  %v393_v11 = vld [vmem:[#allocation5 + $0x30] sm:$0xff]   ;;  %p476_p11 = scmp.lt.s32.totalorder %s294_s8, %s294_s8 }
  0x3a   :  { %341 = vmatprep.subr.bf16.mxu0 %v504_v0  ;;  %361 = vmatprep.subr.bf16.mxu1 %v504_v0  ;;  %v394_v12 = vld [vmem:[#allocation5 + $0x38] sm:$0xff]   ;;  %v399_v14 = vld [vmem:[#allocation7 + $0x20] sm:$0xff]   ;;  %v400_v15 = vld [vmem:[#allocation7 + $0x28] sm:$0xff]  }
  0x3b   :  { %v61_v13 = vld [vmem:[#allocation2] sm:$0xf]  ;;  %v401_v16 = vld [vmem:[#allocation7 + $0x30] sm:$0xff]  }
  0x3c   :  { %v402_v17 = vld [vmem:[#allocation7 + $0x38] sm:$0xff]  }
  0x3d   :  { %342 = vmatpush3.bf16.msra.mxu0 %v388_v2  ;;  %362 = vmatpush3.bf16.msra.mxu1 %v396_v6  ;;  %v303_v18 = vld [vmem:[%s599_s2] ss:$0 sm:$0xff]  ;;  %s471_s2 = scalar_lea.vmem %s294_s8, 128 }
  0x3e   :  { %343 = vmatprep.subr.bf16.mxu0 %v504_v0  ;;  %363 = vmatprep.subr.bf16.mxu1 %v504_v0  ;;  %v312_v26 = vld [vmem:[%s601_s4] ss:$0 sm:$0xff]  ;;  %p472_p10 = scmp.ne.s32.totalorder %s294_s8, %s471_s2  ;;  %p477_p12 = scmp.lt.s32.totalorder %s471_s2, %s471_s2 }
  0x40   :  { %p478_p13 = por %p477_p12, %p476_p11 }
  0x41   :  { %344 = vmatpush3.bf16.msra.mxu0 %v389_v3  ;;  %364 = vmatpush3.bf16.msra.mxu1 %v397_v8 }
  0x42   :  { %345 = vmatprep.subr.bf16.mxu0 %v504_v0  ;;  %365 = vmatprep.subr.bf16.mxu1 %v504_v0  ;;  %p479_p0 = pnand %p478_p13, %p472_p10 }
  0x45   :  { %346 = vmatpush3.bf16.msra.mxu0 %v390_v5  ;;  %366 = vmatpush3.bf16.msra.mxu1 %v398_v10 }
  0x46   :  { %347 = vmatprep.subr.bf16.mxu0 %v504_v0  ;;  %367 = vmatprep.subr.bf16.mxu1 %v504_v0 }
  0x49   :  { %348 = vmatpush3.bf16.msra.mxu0 %v391_v7  ;;  %368 = vmatpush3.bf16.msra.mxu1 %v399_v14 }
  0x4a   :  { %349 = vmatprep.subr.bf16.mxu0 %v504_v0  ;;  %369 = vmatprep.subr.bf16.mxu1 %v504_v0 }
  0x4d   :  { %350 = vmatpush3.bf16.msra.mxu0 %v392_v9  ;;  %370 = vmatpush3.bf16.msra.mxu1 %v400_v15 }
  0x4e   :  { %351 = vmatprep.subr.bf16.mxu0 %v504_v0  ;;  %371 = vmatprep.subr.bf16.mxu1 %v504_v0 }
  0x51   :  { %352 = vmatpush3.bf16.msra.mxu0 %v393_v11  ;;  %372 = vmatpush3.bf16.msra.mxu1 %v401_v16 }
  0x52   :  { %353 = vmatprep.subr.bf16.mxu0 %v504_v0  ;;  %373 = vmatprep.subr.bf16.mxu1 %v504_v0 }
  0x55   :  { %354 = vmatpush3.bf16.msra.mxu0 %v394_v12  ;;  %374 = vmatpush3.bf16.msra.mxu1 %v402_v17 }
  0x58   :  { %356 = vmatmul.mubr.bf16.vlgmr.msra.gmra.mrb[0].mxu0 %v61_v13 }
 0x12b   :  { %v167_v19 = vpop.f32.mrb[0].mxu0 }
 0x12c   :  { %v168_v20 = vadd.f32 %v303_v18, %v167_v19  ;;  %v357_v21 = vpop.f32.mrb[1].mxu0 }
 0x12d   :  { %v170_v22 = vpop.f32.mrb[2].mxu0 }
 0x12e   :  { %403 = vtanh.f32 %v168_v20  ;;  %v358_v23 = vpop.f32.mrb[3].mxu0 }
 0x138   :  { %v404_v24 = vpop.eup %403 }
 0x139   :  { %v191_v25 = vpack.c.bf16 %v404_v24, %v404_v24 }
 0x13b   :  { %376 = vmatmul.mubr.bf16.vlgmr.msra.gmra.mrb[0].mxu1 %v191_v25 }
 0x20e   :  { %v280_v27 = vpop.f32.mrb[0].mxu1 }
 0x20f   :  { %v281_v28 = vadd.f32 %v312_v26, %v280_v27  ;;  %v377_v29 = vpop.f32.mrb[1].mxu1 }
 0x210   :  { %v283_v30 = vpop.f32.mrb[2].mxu1 }
 0x211   :  { %286 = vst [vmem:[#allocation8] sm:$0xff] %v281_v28  ;;  %v378_v31 = vpop.f32.mrb[3].mxu1 }
 0x212   :  { %482 = shalt.err (!%p479_p0)
}
 0x213   :  { %s483_s4 = scalar_lea.hbm %s602_s5, 128 }
 0x214   :  { %p484_p1 = scmp.ne.s32.totalorder %s602_s5, %s483_s4  ;;  %p487_p2 = scmp.lt.u32.totalorder %s483_s4, %s602_s5 }
 0x216   :  { %p489_p3 = pnand %p487_p2, %p484_p1 }
 0x218   :  { %492 = shalt.err (!%p489_p3)
}
 0x219   :  { %296 = dma.vmem_to_hbm [thread:$0]  %s294_s8, 128, %s602_s5, [#allocation4]  }
 0x21a   :  { %497 = dma.done.wait [#allocation4], 128  }
 0x21b   :  { %498 = vsyncadd [#allocation4], 4294967168 }
 0x21c   :  { %300 = vsyncpa [#allocation3], 1 }
 0x21d   :  { %301 = vsyncpa [#allocation6], 1 }
 0x21e   :  { %302 = vsyncpa [#allocation4], 1 }

</bundles_post_ra>
